<compile_context>
chip_gen: v7x
topology: tpu7x:2x2x1
jax: 0.10.0
libtpu: 0.0.40
codegen_flags: <defaults>
</compile_context>

<pallas_src>
import jax
import jax.numpy as jnp
from jax.experimental import pallas as pl
from jax.experimental.pallas import tpu as pltpu


# ---------------------------------------------------------------------------
# Fused Pallas kernel
# ---------------------------------------------------------------------------
def _make_vae_kernel(num_enc, num_dec, latent, L, B):
    """Fused VAE forward.

    Ref order (inputs):
      x,
      (W, b) for each of `num_enc` encoder hidden layers,
      W_mu_sigma [D, 2K], b_mu_sigma [1, 2K],
      (W, b) for each of `num_dec` decoder layers,
      dropout masks for encoder layers (num_enc),
      dropout masks for decoder hidden layers (num_dec - 1),
      eps [L, B, K]
    Outputs: recon [L*B, d], mu [B, K], logvar [B, K].
    """

    def kernel(*refs):
        idx = 0
        x = refs[idx][...]; idx += 1

        enc = []
        for _ in range(num_enc):
            enc.append((refs[idx][...], refs[idx + 1][...])); idx += 2
        w_ms = refs[idx][...]; b_ms = refs[idx + 1][...]; idx += 2
        dec = []
        for _ in range(num_dec):
            dec.append((refs[idx][...], refs[idx + 1][...])); idx += 2
        enc_masks = [refs[idx + i][...] for i in range(num_enc)]; idx += num_enc
        dec_masks = [refs[idx + i][...] for i in range(num_dec - 1)]; idx += num_dec - 1
        eps = refs[idx][...]; idx += 1

        recon_ref = refs[idx]
        mu_ref = refs[idx + 1]
        logvar_ref = refs[idx + 2]

        # ---- encoder: h = relu(dropout(W h + b)) ----
        h = x
        for (w, b), m in zip(enc, enc_masks):
            y = jnp.dot(h, w, preferred_element_type=jnp.float32) + b
            y = y * m                      # inverted-scaling dropout baked into m
            h = jnp.maximum(y, 0.0)

        # ---- fused mu / logvar projection: one [D, 2K] matmul, then slice ----
        ms = jnp.dot(h, w_ms, preferred_element_type=jnp.float32) + b_ms
        mu = ms[:, :latent]
        logvar = ms[:, latent:]
        mu_ref[...] = mu
        logvar_ref[...] = logvar

        # ---- reparameterize: z = eps * exp(0.5*logvar) + mu ----
        std = jnp.exp(0.5 * logvar)
        z = eps * std[None, :, :] + mu[None, :, :]          # (L, B, K)
        h = z.reshape(L * B, latent)

        # ---- decoder: hidden layers relu(dropout(.)), final layer sigmoid ----
        for i, (w, b) in enumerate(dec):
            y = jnp.dot(h, w, preferred_element_type=jnp.float32) + b
            if i < num_dec - 1:
                y = y * dec_masks[i]
                h = jnp.maximum(y, 0.0)
            else:
                recon_ref[...] = 1.0 / (1.0 + jnp.exp(-y))

    return kernel


# ---------------------------------------------------------------------------
# Parameter init (matches torch.nn.Linear default init) + forward wrapper
# ---------------------------------------------------------------------------
def init_linear(key, fan_in, fan_out):
    kw, kb = jax.random.split(key)
    bound = 1.0 / jnp.sqrt(fan_in)
    w = jax.random.uniform(kw, (fan_in, fan_out), jnp.float32, -bound, bound)
    b = jax.random.uniform(kb, (fan_out,), jnp.float32, -bound, bound)
    return w, b


def init_vae_params(key, d, layer):
    """darray = [d] + layer, mirroring the PyTorch __init__."""
    darray = [d] + list(layer)
    l = len(layer)
    params = {"inet": [], "gnet": []}
    keys = jax.random.split(key, (l - 1) + 2 + l)
    k = 0
    for i in range(l - 1):
        params["inet"].append(init_linear(keys[k], darray[i], darray[i + 1])); k += 1
    params["mu"] = init_linear(keys[k], darray[l - 1], darray[l]); k += 1
    params["sigma"] = init_linear(keys[k], darray[l - 1], darray[l]); k += 1
    for i in range(l):
        params["gnet"].append(init_linear(keys[k], darray[l - i], darray[l - i - 1])); k += 1
    return params


def vae_forward(params, x, L, key, dropout_p=0.3):
    """Returns (recon [L, B, d], mu [B, K], logvar [B, K]); training=True semantics."""
    l = len(params["gnet"])
    num_enc = l - 1
    num_dec = l
    B, d = x.shape
    K = params["mu"][0].shape[1]

    # Fuse mu / sigma heads into a single projection [D_enc, 2K].
    w_ms = jnp.concatenate([params["mu"][0], params["sigma"][0]], axis=1)
    b_ms = jnp.concatenate([params["mu"][1], params["sigma"][1]]).reshape(1, 2 * K)

    # Randomness derived from `key`: dropout keep-masks (scaled) and eps.
    k_eps, k_drop = jax.random.split(key)
    n_masks = max(num_enc + num_dec - 1, 1)
    drop_keys = jax.random.split(k_drop, n_masks)
    scale = 1.0 / (1.0 - dropout_p)

    enc_masks = []
    for i, (w, _) in enumerate(params["inet"]):
        keep = jax.random.bernoulli(drop_keys[i], 1.0 - dropout_p, (B, w.shape[1]))
        enc_masks.append(keep.astype(jnp.float32) * scale)
    dec_masks = []
    for j in range(num_dec - 1):
        w = params["gnet"][j][0]
        keep = jax.random.bernoulli(
            drop_keys[num_enc + j], 1.0 - dropout_p, (L * B, w.shape[1]))
        dec_masks.append(keep.astype(jnp.float32) * scale)

    eps = jax.random.normal(k_eps, (L, B, K), jnp.float32)

    # Assemble operands in the order the kernel expects.
    inputs = [x]
    for w, b in params["inet"]:
        inputs += [w, b.reshape(1, -1)]
    inputs += [w_ms, b_ms]
    for w, b in params["gnet"]:
        inputs += [w, b.reshape(1, -1)]
    inputs += enc_masks + dec_masks + [eps]

    kernel = _make_vae_kernel(num_enc, num_dec, K, L, B)
    vmem = pl.BlockSpec(memory_space=pltpu.MemorySpace.VMEM)

    recon_flat, mu, logvar = pl.pallas_call(
        kernel,
        out_shape=(
            jax.ShapeDtypeStruct((L * B, d), jnp.float32),
            jax.ShapeDtypeStruct((B, K), jnp.float32),
            jax.ShapeDtypeStruct((B, K), jnp.float32),
        ),
        in_specs=[vmem] * len(inputs),
        out_specs=(vmem, vmem, vmem),
    )(*inputs)

    return recon_flat.reshape(L, B, d), mu, logvar


# ---------------------------------------------------------------------------
if __name__ == "__main__":
    # args: d=32, layer=[16, 8]  (so l=2, latent dim=8),  L=2,  batch=4
    d = 32
    layer = [16, 8]
    L = 2
    B = 4

    root = jax.random.PRNGKey(0)
    k_params, k_x, k_rng = jax.random.split(root, 3)

    params = init_vae_params(k_params, d, layer)
    x = jax.random.uniform(k_x, (B, d), jnp.float32)  # inputs in [0,1], like BCE targets

    recon, mu, logvar = vae_forward(params, x, L, k_rng)
    jax.block_until_ready((recon, mu, logvar))

    assert recon.shape == (L, B, d)
    assert mu.shape == (B, layer[-1])
    assert logvar.shape == (B, layer[-1])
    assert bool(jnp.all(jnp.isfinite(recon)))
    assert bool(jnp.all((recon >= 0.0) & (recon <= 1.0)))
    assert bool(jnp.all(jnp.isfinite(mu))) and bool(jnp.all(jnp.isfinite(logvar)))

    print("KERNEL_OK")
</pallas_src>

<mosaic_0001>
module attributes {stable_mosaic.version = 11 : i64} {
  func.func @kernel(%arg0: memref<4x32xf32, #tpu.memory_space<vmem>>, %arg1: memref<32x16xf32, #tpu.memory_space<vmem>>, %arg2: memref<1x16xf32, #tpu.memory_space<vmem>>, %arg3: memref<16x16xf32, #tpu.memory_space<vmem>>, %arg4: memref<1x16xf32, #tpu.memory_space<vmem>>, %arg5: memref<8x16xf32, #tpu.memory_space<vmem>>, %arg6: memref<1x16xf32, #tpu.memory_space<vmem>>, %arg7: memref<16x32xf32, #tpu.memory_space<vmem>>, %arg8: memref<1x32xf32, #tpu.memory_space<vmem>>, %arg9: memref<4x16xf32, #tpu.memory_space<vmem>>, %arg10: memref<8x16xf32, #tpu.memory_space<vmem>>, %arg11: memref<2x4x8xf32, #tpu.memory_space<vmem>>, %arg12: memref<8x32xf32, #tpu.memory_space<vmem>>, %arg13: memref<4x8xf32, #tpu.memory_space<vmem>>, %arg14: memref<4x8xf32, #tpu.memory_space<vmem>>) attributes {dimension_semantics = [], scalar_prefetch = 0 : i64, scratch_operands = 0 : i64, tpu.core_type = #tpu.core_type<tc>} {
    %c0 = arith.constant 0 : index
    %c0_0 = arith.constant 0 : index
    %0 = vector.load %arg0[%c0, %c0_0] : memref<4x32xf32, #tpu.memory_space<vmem>>, vector<4x32xf32>
    %c0_1 = arith.constant 0 : index
    %c0_2 = arith.constant 0 : index
    %1 = vector.load %arg1[%c0_1, %c0_2] : memref<32x16xf32, #tpu.memory_space<vmem>>, vector<32x16xf32>
    %c0_3 = arith.constant 0 : index
    %c0_4 = arith.constant 0 : index
    %2 = vector.load %arg2[%c0_3, %c0_4] : memref<1x16xf32, #tpu.memory_space<vmem>>, vector<1x16xf32>
    %c0_5 = arith.constant 0 : index
    %c0_6 = arith.constant 0 : index
    %3 = vector.load %arg3[%c0_5, %c0_6] : memref<16x16xf32, #tpu.memory_space<vmem>>, vector<16x16xf32>
    %c0_7 = arith.constant 0 : index
    %c0_8 = arith.constant 0 : index
    %4 = vector.load %arg4[%c0_7, %c0_8] : memref<1x16xf32, #tpu.memory_space<vmem>>, vector<1x16xf32>
    %c0_9 = arith.constant 0 : index
    %c0_10 = arith.constant 0 : index
    %5 = vector.load %arg5[%c0_9, %c0_10] : memref<8x16xf32, #tpu.memory_space<vmem>>, vector<8x16xf32>
    %c0_11 = arith.constant 0 : index
    %c0_12 = arith.constant 0 : index
    %6 = vector.load %arg6[%c0_11, %c0_12] : memref<1x16xf32, #tpu.memory_space<vmem>>, vector<1x16xf32>
    %c0_13 = arith.constant 0 : index
    %c0_14 = arith.constant 0 : index
    %7 = vector.load %arg7[%c0_13, %c0_14] : memref<16x32xf32, #tpu.memory_space<vmem>>, vector<16x32xf32>
    %c0_15 = arith.constant 0 : index
    %c0_16 = arith.constant 0 : index
    %8 = vector.load %arg8[%c0_15, %c0_16] : memref<1x32xf32, #tpu.memory_space<vmem>>, vector<1x32xf32>
    %c0_17 = arith.constant 0 : index
    %c0_18 = arith.constant 0 : index
    %9 = vector.load %arg9[%c0_17, %c0_18] : memref<4x16xf32, #tpu.memory_space<vmem>>, vector<4x16xf32>
    %c0_19 = arith.constant 0 : index
    %c0_20 = arith.constant 0 : index
    %10 = vector.load %arg10[%c0_19, %c0_20] : memref<8x16xf32, #tpu.memory_space<vmem>>, vector<8x16xf32>
    %c0_21 = arith.constant 0 : index
    %c0_22 = arith.constant 0 : index
    %c0_23 = arith.constant 0 : index
    %11 = vector.load %arg11[%c0_21, %c0_22, %c0_23] : memref<2x4x8xf32, #tpu.memory_space<vmem>>, vector<2x4x8xf32>
    %cst = arith.constant dense<0.000000e+00> : vector<4x16xf32>
    %12 = tpu.matmul %0, %1, %cst {dimension_numbers = #tpu.dot_dimension_numbers<[1], [0], [0], [1], [0, 0, 1, 1], [], []>} : vector<4x32xf32>, vector<32x16xf32>, vector<4x16xf32> -> vector<4x16xf32>
    %13 = vector.broadcast %2 : vector<1x16xf32> to vector<4x16xf32>
    %14 = arith.addf %12, %13 : vector<4x16xf32>
    %15 = arith.mulf %14, %9 : vector<4x16xf32>
    %cst_24 = arith.constant 0.000000e+00 : f32
    %16 = vector.broadcast %cst_24 : f32 to vector<4x16xf32>
    %17 = arith.maximumf %15, %16 : vector<4x16xf32>
    %cst_25 = arith.constant dense<0.000000e+00> : vector<4x16xf32>
    %18 = tpu.matmul %17, %3, %cst_25 {dimension_numbers = #tpu.dot_dimension_numbers<[1], [0], [0], [1], [0, 0, 1, 1], [], []>} : vector<4x16xf32>, vector<16x16xf32>, vector<4x16xf32> -> vector<4x16xf32>
    %19 = vector.broadcast %4 : vector<1x16xf32> to vector<4x16xf32>
    %20 = arith.addf %18, %19 : vector<4x16xf32>
    %21 = vector.extract_strided_slice %20 {offsets = [0, 0], sizes = [4, 8], strides = [1, 1]} : vector<4x16xf32> to vector<4x8xf32>
    %22 = vector.extract_strided_slice %20 {offsets = [0, 8], sizes = [4, 8], strides = [1, 1]} : vector<4x16xf32> to vector<4x8xf32>
    %c0_26 = arith.constant 0 : index
    %c0_27 = arith.constant 0 : index
    %23 = vector.load %arg13[%c0_26, %c0_27] : memref<4x8xf32, #tpu.memory_space<vmem>>, vector<4x8xf32>
    tpu.vector_store %arg13[%c0_26, %c0_27], %21 {strides = array<i32>} : memref<4x8xf32, #tpu.memory_space<vmem>>, vector<4x8xf32>,
    %c0_28 = arith.constant 0 : index
    %c0_29 = arith.constant 0 : index
    %24 = vector.load %arg14[%c0_28, %c0_29] : memref<4x8xf32, #tpu.memory_space<vmem>>, vector<4x8xf32>
    tpu.vector_store %arg14[%c0_28, %c0_29], %22 {strides = array<i32>} : memref<4x8xf32, #tpu.memory_space<vmem>>, vector<4x8xf32>,
    %cst_30 = arith.constant 5.000000e-01 : f32
    %25 = vector.broadcast %cst_30 : f32 to vector<4x8xf32>
    %26 = arith.mulf %25, %22 : vector<4x8xf32>
    %27 = math.exp %26 : vector<4x8xf32>
    %28 = vector.shape_cast %27 : vector<4x8xf32> to vector<1x4x8xf32>
    %29 = vector.broadcast %28 : vector<1x4x8xf32> to vector<2x4x8xf32>
    %30 = arith.mulf %11, %29 : vector<2x4x8xf32>
    %31 = vector.shape_cast %21 : vector<4x8xf32> to vector<1x4x8xf32>
    %32 = vector.broadcast %31 : vector<1x4x8xf32> to vector<2x4x8xf32>
    %33 = arith.addf %30, %32 : vector<2x4x8xf32>
    %34 = vector.shape_cast %33 : vector<2x4x8xf32> to vector<8x8xf32>
    %cst_31 = arith.constant dense<0.000000e+00> : vector<8x16xf32>
    %35 = tpu.matmul %34, %5, %cst_31 {dimension_numbers = #tpu.dot_dimension_numbers<[1], [0], [0], [1], [0, 0, 1, 1], [], []>} : vector<8x8xf32>, vector<8x16xf32>, vector<8x16xf32> -> vector<8x16xf32>
    %36 = vector.broadcast %6 : vector<1x16xf32> to vector<8x16xf32>
    %37 = arith.addf %35, %36 : vector<8x16xf32>
    %38 = arith.mulf %37, %10 : vector<8x16xf32>
    %cst_32 = arith.constant 0.000000e+00 : f32
    %39 = vector.broadcast %cst_32 : f32 to vector<8x16xf32>
    %40 = arith.maximumf %38, %39 : vector<8x16xf32>
    %cst_33 = arith.constant dense<0.000000e+00> : vector<8x32xf32>
    %41 = tpu.matmul %40, %7, %cst_33 {dimension_numbers = #tpu.dot_dimension_numbers<[1], [0], [0], [1], [0, 0, 1, 1], [], []>} : vector<8x16xf32>, vector<16x32xf32>, vector<8x32xf32> -> vector<8x32xf32>
    %42 = vector.broadcast %8 : vector<1x32xf32> to vector<8x32xf32>
    %43 = arith.addf %41, %42 : vector<8x32xf32>
    %cst_34 = arith.constant 0.000000e+00 : f32
    %44 = vector.broadcast %cst_34 : f32 to vector<8x32xf32>
    %45 = arith.subf %44, %43 : vector<8x32xf32>
    %46 = math.exp %45 : vector<8x32xf32>
    %cst_35 = arith.constant 1.000000e+00 : f32
    %47 = vector.broadcast %cst_35 : f32 to vector<8x32xf32>
    %48 = arith.addf %47, %46 : vector<8x32xf32>
    %cst_36 = arith.constant 1.000000e+00 : f32
    %49 = vector.broadcast %cst_36 : f32 to vector<8x32xf32>
    %50 = arith.divf %49, %48 : vector<8x32xf32>
    %c0_37 = arith.constant 0 : index
    %c0_38 = arith.constant 0 : index
    %51 = vector.load %arg12[%c0_37, %c0_38] : memref<8x32xf32, #tpu.memory_space<vmem>>, vector<8x32xf32>
    tpu.vector_store %arg12[%c0_37, %c0_38], %50 {strides = array<i32>} : memref<8x32xf32, #tpu.memory_space<vmem>>, vector<8x32xf32>,
    return
  }
}

</mosaic_0001>

<bundles_post_ra>
// kernel: tpu_custom_call.1
= control target key start
LH: loop header
LB: loop body
LE: loop exit
PB: predicated region body
PF: predicated region fallthrough
CT: control target
= control target key end

     0   :  { %20 = vsyncpa [#allocation3], 0  ;;  %s831_s0 = inlined_call_operand.hbm [shape: f32[4,32], index: 0, kind: input, shape index: {}]   ;;  %s832_s1 = inlined_call_operand.vmem [shape: f32[32,16], index: 1, kind: input, shape index: {}]   ;;  %s833_s2 = inlined_call_operand.vmem [shape: f32[1,16], index: 2, kind: input, shape index: {}]   ;;  %s834_s3 = inlined_call_operand.vmem [shape: f32[16,16], index: 3, kind: input, shape index: {}]   ;;  %s835_s4 = inlined_call_operand.vmem [shape: f32[1,16], index: 4, kind: input, shape index: {}]   ;;  %s836_s5 = inlined_call_operand.vmem [shape: f32[8,16], index: 5, kind: input, shape index: {}]   ;;  %s837_s6 = inlined_call_operand.vmem [shape: f32[1,16], index: 6, kind: input, shape index: {}]   ;;  %s838_s7 = inlined_call_operand.vmem [shape: f32[16,32], index: 7, kind: input, shape index: {}]   ;;  %s839_s8 = inlined_call_operand.vmem [shape: f32[1,32], index: 8, kind: input, shape index: {}]   ;;  %s840_s9 = inlined_call_operand.vmem [shape: f32[4,16], index: 9, kind: input, shape index: {}]   ;;  %s841_s10 = inlined_call_operand.vmem [shape: f32[8,16], index: 10, kind: input, shape index: {}]   ;;  %s842_s11 = inlined_call_operand.vmem [shape: f32[2,4,8], index: 11, kind: input, shape index: {}]   ;;  %s843_s12 = inlined_call_operand.hbm [shape: f32[8,32], index: 12, kind: output, shape index: {0}]   ;;  %s844_s13 = inlined_call_operand.hbm [shape: f32[4,8], index: 13, kind: output, shape index: {1}]   ;;  %s845_s14 = inlined_call_operand.hbm [shape: f32[4,8], index: 14, kind: output, shape index: {2}]  }
   0x1   :  { %21 = vsyncpa [#allocation4], 0 }
   0x2   :  { %22 = vsyncpa [#allocation7], 0  ;;  %s639_s29 = smov [#allocation2]   ;;  %s545_s17 = scalar_lea.hbm %s831_s0, 64 }
   0x3   :  { %s29_s30 = sshll.u32 %s639_s29, 4  ;;  %p546_p0 = scmp.ne.s32.totalorder %s831_s0, %s545_s17  ;;  %s30_s30 = int_to_ptr.vmem [resolvable:$true] %s29_s30 }
   0x4   :  { %p549_p1 = scmp.lt.u32.totalorder %s545_s17, %s831_s0 }
   0x6   :  { %p551_p2 = pnand %p549_p1, %p546_p0 }
   0x8   :  { %554 = shalt.err (!%p551_p2)
}
   0x9   :  { %s555_s22 = scalar_lea.vmem %s30_s30, 64  ;;  %p560_p4 = scmp.lt.s32.totalorder %s30_s30, %s30_s30 }
   0xa   :  { %p556_p3 = scmp.ne.s32.totalorder %s30_s30, %s555_s22  ;;  %p561_p5 = scmp.lt.s32.totalorder %s555_s22, %s555_s22 }
   0xc   :  { %p562_p6 = por %p561_p5, %p560_p4 }
   0xe   :  { %p563_p7 = pnand %p562_p6, %p556_p3 }
  0x10   :  { %566 = shalt.err (!%p563_p7)
}
  0x11   :  { %32 = dma.hbm_to_vmem [thread:$0]  %s831_s0, 64, %s30_s30, [#allocation3]  }
  0x12   :  { %633 = dma.done.wait [#allocation3], 64  }
  0x13   :  { %634 = vsyncadd [#allocation3], 4294967232  ;;  %v640_v0 = vmov 0.0|0.0   ;;  %vm641_vm0 = vmmov 0   ;;  %v642_v1 = vmov 0.0   ;;  %v59_v2 = vld [vmem:[%s832_s1] sm:$0xff] }
  0x14   :  { %519 = vmatprep.subr.bf16.mxu0 %v640_v0  ;;  %497 = vmatprep.mubr.msk.f32.mxu0 %vm641_vm0, %v642_v1  ;;  %v60_v3 = vld [vmem:[%s832_s1 + $0x8] sm:$0xff]  ;;  %v61_v4 = vld [vmem:[%s832_s1 + $0x10] sm:$0xff]  ;;  %v62_v6 = vld [vmem:[%s832_s1 + $0x18] sm:$0xff]  ;;  %vm82_vm1 = vcmask 261120   ;;  %vm164_vm2 = vcmask 130048   ;;  %vm238_vm3 = vcmask 60416  }
  0x15   :  { %525 = vmatprep.subr.bf16.mxu1 %v640_v0  ;;  %504 = vmatprep.mubr.msk.f32.mxu1 %vm641_vm0, %v642_v1  ;;  %v520_v5 = vpack.c.bf16 %v60_v3, %v59_v2  ;;  %v523_v7 = vpack.c.bf16 %v62_v6, %v61_v4  ;;  %v58_v8 = vld [vmem:[#allocation2] sm:$0xf]  ;;  %v65_v10 = vld [vmem:[%s834_s3 + $0x8] sm:$0xff]  ;;  %s643_s24 = smov 120   ;;  %v75_v28 = vld [vmem:[%s842_s11 + $0x4] sm:$0xf] }
  0x16   :  { %v64_v9 = vld [vmem:[%s834_s3] sm:$0xff]  ;;  %vm265_vm4 = vcmask 64512   ;;  %v70_v37 = vld [vmem:[%s838_s7 + $0x8] sm:$0xff]  ;;  %s644_s17 = smov [#allocation6]  }
  0x17   :  { %521 = vmatpush3.bf16.msra.mxu0 %v520_v5  ;;  %v526_v11 = vpack.c.bf16 %v65_v10, %v64_v9  ;;  %v468_v12 = vld [vmem:[%s833_s2] ss:$0 sm:$0xff]  ;;  %s442_s18 = sshll.u32 %s644_s17, 4  ;;  %s443_s18 = int_to_ptr.vmem [resolvable:$true] %s442_s18 }
  0x18   :  { %522 = vmatprep.subr.bf16.mxu0 %v640_v0  ;;  %v72_v13 = vld [vmem:[%s840_s9] sm:$0xf]  ;;  %p572_p9 = scmp.lt.s32.totalorder %s443_s18, %s443_s18 }
  0x19   :  { %527 = vmatpush3.bf16.msra.mxu1 %v526_v11  ;;  %v470_v19 = vld [vmem:[%s835_s4] ss:$0 sm:$0xff] }
  0x1a   :  { %507 = vmatprep.subr.mxu1 %v642_v1  ;;  %v67_v25 = vld [vmem:[%s836_s5] sm:$0xff] }
  0x1b   :  { %524 = vmatpush3.bf16.msra.mxu0 %v523_v7  ;;  %v74_v27 = vld [vmem:[%s842_s11] sm:$0xf] }
  0x1c   :  { %528 = vmatprep.subr.bf16.mxu0 %v640_v0  ;;  %v69_v36 = vld [vmem:[%s838_s7] sm:$0xff]  ;;  %s567_s7 = scalar_lea.vmem %s443_s18, 64 }
  0x1d   :  { %v529_v38 = vpack.c.bf16 %v70_v37, %v69_v36  ;;  %v472_v39 = vld [vmem:[%s837_s6] ss:$0 sm:$0xff]  ;;  %p568_p8 = scmp.ne.s32.totalorder %s443_s18, %s567_s7  ;;  %p573_p10 = scmp.lt.s32.totalorder %s567_s7, %s567_s7 }
  0x1e   :  { %498 = vmatmul.mubr.msk.f32.vlgmr.msra.gmra.mrb[0].mxu0 %vm82_vm1, %v58_v8  ;;  %v73_v40 = vld [vmem:[%s841_s10] sm:$0xff] }
  0x1f   :  { %516 = vmatprep.mubr.msk.f32.mxu0 %vm641_vm0, %v642_v1  ;;  %530 = vmatpush3.bf16.msra.mxu0 %v529_v38  ;;  %p574_p11 = por %p573_p10, %p572_p9 }
  0x21   :  { %p575_p12 = pnand %p574_p11, %p568_p8 }
  0xf1   :  { %v152_v14 = vpop.f32.mrb[0].mxu0 }
  0xf2   :  { %v153_v15 = vadd.f32 %v468_v12, %v152_v14  ;;  %v499_v16 = vpop.f32.mrb[1].mxu0 }
  0xf4   :  { %v156_v17 = vmul.f32 %v153_v15, %v72_v13 }
  0xf6   :  { %v157_v18 = vmax.f32 %v156_v17, 0.0 }
  0xf8   :  { %505 = vmatmul.mubr.msk.f32.vlgmr.msra.gmra.mrb[0].mxu1 %vm164_vm2, %v157_v18 }
  0xf9   :  { %509 = vmatprep.mubr.msk.f32.mxu1 %vm641_vm0, %v642_v1  ;;  %508 = vmatpush3.msra.mxu1 %v67_v25 }
 0x1cb   :  { %v234_v20 = vpop.f32.mrb[0].mxu1 }
 0x1cc   :  { %v235_v21 = vadd.f32 %v470_v19, %v234_v20  ;;  %v506_v22 = vpop.f32.mrb[1].mxu1 }
 0x1ce   :  { %v245_v23 = vmul.f32 0.5, %v235_v21  ;;  %239 = vst.msk [vmem:[#allocation6] sm:$0xf] %vm238_vm3, %v235_v21 }
 0x1d0   :  { %v246_v24 = vmul.f32 1.442695, %v245_v23 }
 0x1d2   :  { %539 = vpow2.f32 %v246_v24 }
 0x1dc   :  { %v540_v26 = vpop.eup %539 }
 0x1dd   :  { %249 = vrot.lane.b32.xlu0 %v540_v26, %s643_s24 }
 0x1e1   :  { %241 = vrot.lane.b32.xlu0 %v235_v21, %s643_s24 }
 0x24f   :  { %v250_v29 = vpop.permute.xlu0 %249 }
 0x250   :  { %v252_v30 = vmul.f32 %v250_v29, %v74_v27  ;;  %v253_v31 = vmul.f32 %v250_v29, %v75_v28 }
 0x252   :  { %v254_v32 = vadd.f32 %v252_v30, %v235_v21  ;;  %v255_v33 = vadd.f32 %v253_v31, %v235_v21 }
 0x253   :  { %v242_v34 = vpop.permute.xlu0 %241 }
 0x254   :  { %v264_v35 = vcombine.low %v254_v32, %v255_v33  ;;  %244 = vst.msk [vmem:[#allocation8] sm:$0xf] %vm238_vm3, %v242_v34 }
 0x256   :  { %510 = vmatmul.mubr.msk.f32.vlgmr.msra.gmra.mrb[2].mxu1 %vm265_vm4, %v264_v35 }
 0x329   :  { %v334_v41 = vpop.f32.mrb[2].mxu1 }
 0x32a   :  { %v335_v42 = vadd.f32 %v472_v39, %v334_v41  ;;  %v511_v43 = vpop.f32.mrb[3].mxu1 }
 0x32c   :  { %v338_v44 = vmul.f32 %v335_v42, %v73_v40 }
 0x32e   :  { %v339_v45 = vmax.f32 %v338_v44, 0.0 }
 0x330   :  { %517 = vmatmul.mubr.msk.f32.vlgmr.msra.gmra.mrb[2].mxu0 %vm164_vm2, %v339_v45 }
 0x331   :  { %578 = shalt.err (!%p575_p12)
}
 0x332   :  { %s579_s10 = scalar_lea.hbm %s844_s13, 64 }
 0x333   :  { %p580_p13 = scmp.ne.s32.totalorder %s844_s13, %s579_s10  ;;  %p583_p0 = scmp.lt.u32.totalorder %s579_s10, %s844_s13 }
 0x335   :  { %p585_p1 = pnand %p583_p0, %p580_p13 }
 0x337   :  { %588 = shalt.err (!%p585_p1)
}
 0x338   :  { %445 = dma.vmem_to_hbm [thread:$0]  %s443_s18, 64, %s844_s13, [#allocation7]  }
 0x339   :  { %s645_s2 = smov [#allocation8]  }
 0x33a   :  { %s452_s9 = sshll.u32 %s645_s2, 4  ;;  %s453_s9 = int_to_ptr.vmem [resolvable:$true] %s452_s9 }
 0x33b   :  { %s589_s24 = scalar_lea.vmem %s453_s9, 64  ;;  %p594_p3 = scmp.lt.s32.totalorder %s453_s9, %s453_s9 }
 0x33c   :  { %p590_p2 = scmp.ne.s32.totalorder %s453_s9, %s589_s24  ;;  %p595_p4 = scmp.lt.s32.totalorder %s589_s24, %s589_s24 }
 0x33e   :  { %p596_p5 = por %p595_p4, %p594_p3 }
 0x340   :  { %p597_p6 = pnand %p596_p5, %p590_p2 }
 0x342   :  { %600 = shalt.err (!%p597_p6)
}
 0x343   :  { %s601_s26 = scalar_lea.hbm %s845_s14, 64 }
 0x344   :  { %p602_p7 = scmp.ne.s32.totalorder %s845_s14, %s601_s26  ;;  %p605_p8 = scmp.lt.u32.totalorder %s601_s26, %s845_s14 }
 0x346   :  { %p607_p9 = pnand %p605_p8, %p602_p7 }
 0x348   :  { %610 = shalt.err (!%p607_p9)
}
 0x349   :  { %455 = dma.vmem_to_hbm [thread:$0]  %s453_s9, 64, %s845_s14, [#allocation7]   ;;  %v474_v46 = vld [vmem:[%s839_s8] ss:$0 sm:$0xff] }
 0x34a   :  { %s646_s15 = smov [#allocation5]  }
 0x34b   :  { %s432_s16 = sshll.u32 %s646_s15, 4  ;;  %s433_s16 = int_to_ptr.vmem [resolvable:$true] %s432_s16 }
 0x34c   :  { %s611_s14 = scalar_lea.vmem %s433_s16, 128  ;;  %p616_p11 = scmp.lt.s32.totalorder %s433_s16, %s433_s16 }
 0x34d   :  { %p612_p10 = scmp.ne.s32.totalorder %s433_s16, %s611_s14  ;;  %p617_p12 = scmp.lt.s32.totalorder %s611_s14, %s611_s14 }
 0x34f   :  { %p618_p13 = por %p617_p12, %p616_p11 }
 0x351   :  { %p619_p0 = pnand %p618_p13, %p612_p10 }
 0x403   :  { %v415_v47 = vpop.f32.mrb[2].mxu0 }
 0x404   :  { %v416_v48 = vadd.f32 %v474_v46, %v415_v47  ;;  %v518_v49 = vpop.f32.mrb[3].mxu0 }
 0x406   :  { %v419_v50 = vsub.f32 0.0, %v416_v48 }
 0x408   :  { %v420_v51 = vmul.f32 1.442695, %v419_v50 }
 0x40a   :  { %541 = vpow2.f32 %v420_v51 }
 0x414   :  { %v542_v52 = vpop.eup %541 }
 0x415   :  { %v422_v53 = vadd.f32 1.0, %v542_v52 }
 0x417   :  { %543 = vrcp.f32 %v422_v53 }
 0x421   :  { %v544_v54 = vpop.eup %543 }
 0x422   :  { %425 = vst.msk [vmem:[#allocation5] sm:$0xff] %vm82_vm1, %v544_v54 }
 0x423   :  { %622 = shalt.err (!%p619_p0)
}
 0x424   :  { %s623_s18 = scalar_lea.hbm %s843_s12, 128 }
 0x425   :  { %p624_p1 = scmp.ne.s32.totalorder %s843_s12, %s623_s18  ;;  %p627_p2 = scmp.lt.u32.totalorder %s623_s18, %s843_s12 }
 0x427   :  { %p629_p3 = pnand %p627_p2, %p624_p1 }
 0x429   :  { %632 = shalt.err (!%p629_p3)
}
 0x42a   :  { %435 = dma.vmem_to_hbm [thread:$0]  %s433_s16, 128, %s843_s12, [#allocation4]  }
 0x42b   :  { %635 = dma.done.wait [#allocation4], 128  }
 0x42c   :  { %636 = vsyncadd [#allocation4], 4294967168 }
 0x42d   :  { %637 = dma.done.wait [#allocation7], 128  }
 0x42e   :  { %638 = vsyncadd [#allocation7], 4294967168 }
 0x42f   :  { %465 = vsyncpa [#allocation3], 1 }
 0x430   :  { %466 = vsyncpa [#allocation4], 1 }
 0x431   :  { %467 = vsyncpa [#allocation7], 1 }

</bundles_post_ra>
